<compile_context>
chip_gen: v6e
topology: v6e:2x2x1
jax: 0.10.0
libtpu: 0.0.40
codegen_flags: <defaults>
</compile_context>

<pallas_src>
import functools
import math

import jax
import jax.numpy as jnp
from jax.experimental import pallas as pl
from jax.experimental.pallas import tpu as pltpu


def _round_up(x, m):
    return ((x + m - 1) // m) * m


def _pick_tile(total, want):
    """Largest multiple of 128 <= want that divides `total` (total % 128 == 0)."""
    t = max(128, min(want, total) // 128 * 128)
    while total % t:
        t -= 128
    return t


def _maybe_pad(a, pads):
    """jnp.pad, skipped entirely when no padding is needed (avoids an HBM copy)."""
    if all(lo == 0 and hi == 0 for lo, hi in pads):
        return a
    return jnp.pad(a, pads)


# ---------------- Stage 1: support = X @ W ----------------
def _support_kernel(x_ref, w_ref, o_ref):
    o_ref[...] = jnp.dot(
        x_ref[...], w_ref[...], preferred_element_type=jnp.float32
    ).astype(o_ref.dtype)


# ---------------- Stage 2: out = adj @ support + bias (K-tiled) ----------------
def _aggregate_kernel(adj_ref, sup_ref, b_ref, o_ref, acc_ref):
    k = pl.program_id(1)

    @pl.when(k == 0)
    def _():
        acc_ref[...] = jnp.zeros_like(acc_ref)

    acc_ref[...] += jnp.dot(
        adj_ref[...], sup_ref[...], preferred_element_type=jnp.float32
    )

    @pl.when(k == pl.num_programs(1) - 1)
    def _():
        o_ref[...] = (acc_ref[...] + b_ref[...]).astype(o_ref.dtype)


@functools.partial(
    jax.jit, static_argnames=("tile_n", "tile_k", "stream_dtype"))
def graph_convolution(x, adj, weight, bias=None, *, tile_n=256, tile_k=512,
                      stream_dtype=None):
    """Pallas GCN forward: adj @ (x @ weight) + bias.

    stream_dtype: dtype used for the adj / support HBM streams of the second
    matmul (e.g. jnp.bfloat16 on v6e/v7x); accumulation is always f32.
    """
    N, F_in = x.shape
    F_out = weight.shape[1]
    assert adj.shape == (N, N)

    out_dtype = x.dtype
    stream_dtype = out_dtype if stream_dtype is None else jnp.dtype(stream_dtype)

    # Pad node / feature dims to multiples of 128 for lane-dense loads/stores
    # and (8,128) tiling.  Zero padding is exact (contributes 0 to the GEMMs).
    N_pad = _round_up(N, 128)
    Fi_pad = _round_up(F_in, 128)
    Fo_pad = _round_up(F_out, 128)
    tile_n = _pick_tile(N_pad, tile_n)
    tile_k = _pick_tile(N_pad, tile_k)

    x_p = _maybe_pad(x, ((0, N_pad - N), (0, Fi_pad - F_in)))
    w_p = _maybe_pad(weight, ((0, Fi_pad - F_in), (0, Fo_pad - F_out)))
    adj_p = _maybe_pad(adj, ((0, N_pad - N), (0, N_pad - N))).astype(stream_dtype)
    if bias is None:
        b_p = jnp.zeros((1, Fo_pad), jnp.float32)
    else:
        b_p = _maybe_pad(bias.reshape(1, F_out).astype(jnp.float32),
                         ((0, 0), (0, Fo_pad - F_out)))

    # ---- Stage 1: row-tiled GEMM for support = X @ W (W held resident) ----
    support = pl.pallas_call(
        _support_kernel,
        out_shape=jax.ShapeDtypeStruct((N_pad, Fo_pad), stream_dtype),
        grid_spec=pltpu.PrefetchScalarGridSpec(
            num_scalar_prefetch=0,
            grid=(N_pad // tile_n,),
            in_specs=[
                pl.BlockSpec((tile_n, Fi_pad), lambda i: (i, 0)),   # X row tile
                pl.BlockSpec((Fi_pad, Fo_pad), lambda i: (0, 0)),   # full W
            ],
            out_specs=pl.BlockSpec((tile_n, Fo_pad), lambda i: (i, 0)),
        ),
        compiler_params=pltpu.CompilerParams(
            dimension_semantics=("parallel",),
        ),
    )(x_p, w_p)

    # ---- Stage 2: K-tiled adj @ support + bias ----
    s_item = jnp.dtype(stream_dtype).itemsize
    o_item = jnp.dtype(out_dtype).itemsize
    footprint = (
        2 * tile_n * tile_k * s_item      # adj tiles (double-buffered)
        + 2 * tile_k * Fo_pad * s_item    # support tiles
        + 2 * tile_n * Fo_pad * o_item    # output tiles
        + tile_n * Fo_pad * 4             # f32 accumulator
        + 2 * Fo_pad * 4                  # bias
    )
    vmem_limit = min(max(footprint + (4 << 20), 32 << 20), 64 << 20)

    flops = 2 * N_pad * N_pad * Fo_pad
    bytes_accessed = (
        N_pad * N_pad * s_item            # adj stream (dominant)
        + (N_pad // tile_n) * N_pad * Fo_pad * s_item
        + N_pad * Fo_pad * o_item
    )

    out = pl.pallas_call(
        _aggregate_kernel,
        out_shape=jax.ShapeDtypeStruct((N_pad, Fo_pad), out_dtype),
        grid_spec=pltpu.PrefetchScalarGridSpec(
            num_scalar_prefetch=0,
            grid=(N_pad // tile_n, N_pad // tile_k),      # reduction axis last
            in_specs=[
                pl.BlockSpec((tile_n, tile_k), lambda i, k: (i, k)),   # adj
                pl.BlockSpec((tile_k, Fo_pad), lambda i, k: (k, 0)),   # support
                pl.BlockSpec((1, Fo_pad), lambda i, k: (0, 0)),        # bias
            ],
            out_specs=pl.BlockSpec((tile_n, Fo_pad), lambda i, k: (i, 0)),
            scratch_shapes=[pltpu.VMEM((tile_n, Fo_pad), jnp.float32)],
        ),
        compiler_params=pltpu.CompilerParams(
            # Row tiles are independent -> "parallel" (megacore on v7x);
            # the K axis carries the accumulator -> "arbitrary".
            dimension_semantics=("parallel", "arbitrary"),
            vmem_limit_bytes=vmem_limit,
        ),
        cost_estimate=pl.CostEstimate(
            flops=flops, transcendentals=0, bytes_accessed=bytes_accessed),
    )(adj_p, support, b_p)

    return out[:N, :F_out]


if __name__ == "__main__":
    # N nodes = 128, in_features = 64, out_features = 128
    N, F_in, F_out = 128, 64, 128

    key = jax.random.PRNGKey(0)
    kx, kadj, kw, kb = jax.random.split(key, 4)

    # Deterministic parameter init mirroring reset_parameters():
    # uniform(-stdv, stdv), stdv = 1/sqrt(out_features)
    stdv = 1.0 / math.sqrt(F_out)
    weight = jax.random.uniform(kw, (F_in, F_out), jnp.float32, -stdv, stdv)
    bias = jax.random.uniform(kb, (F_out,), jnp.float32, -stdv, stdv)

    # Inputs: node features and a dense, row-normalized adjacency matrix.
    x = jax.random.normal(kx, (N, F_in), jnp.float32)
    adj_raw = (jax.random.uniform(kadj, (N, N), jnp.float32) > 0.9).astype(jnp.float32)
    adj = adj_raw + jnp.eye(N, dtype=jnp.float32)
    adj = adj / jnp.sum(adj, axis=1, keepdims=True)

    ref = adj @ (x @ weight) + bias[None, :]

    # f32-streamed path (tight tolerance vs reference).
    out = jax.block_until_ready(graph_convolution(x, adj, weight, bias))
    assert out.shape == (N, F_out)
    assert jnp.allclose(out, ref, atol=1e-4, rtol=1e-4), "f32 mismatch vs reference"

    # No-bias path (module supports bias=False).
    out_nb = jax.block_until_ready(graph_convolution(x, adj, weight, None))
    assert jnp.allclose(out_nb, adj @ (x @ weight), atol=1e-4, rtol=1e-4), \
        "no-bias mismatch vs reference"

    # bf16-streamed path (halves the adj/support HBM streams, f32 accumulate).
    out_bf16 = jax.block_until_ready(
        graph_convolution(x, adj, weight, bias, stream_dtype=jnp.bfloat16))
    assert jnp.allclose(out_bf16, ref, atol=5e-2, rtol=5e-2), "bf16 mismatch vs reference"

    print("KERNEL_OK")
</pallas_src>

<mosaic_0001>
module attributes {stable_mosaic.version = 11 : i64} {
  func.func @_support_kernel(%arg0: i32, %arg1: memref<128x128xf32, #tpu.memory_space<vmem>>, %arg2: memref<128x128xf32, #tpu.memory_space<vmem>>, %arg3: memref<128x128xf32, #tpu.memory_space<vmem>>) attributes {dimension_semantics = [#tpu.dimension_semantics<parallel>], iteration_bounds = array<i64: 1>, scalar_prefetch = 0 : i64, scratch_operands = 0 : i64, tpu.core_type = #tpu.core_type<tc>, window_params = [{transform_indices = @transform_0, window_bounds = array<i64: 128, 128>}, {pipeline_mode = #tpu.pipeline_mode<synchronous>, transform_indices = @transform_1, window_bounds = array<i64: 128, 128>}, {transform_indices = @transform_2, window_bounds = array<i64: 128, 128>}]} {
    %c0 = arith.constant 0 : index
    %c0_0 = arith.constant 0 : index
    %0 = vector.load %arg1[%c0, %c0_0] : memref<128x128xf32, #tpu.memory_space<vmem>>, vector<128x128xf32>
    %c0_1 = arith.constant 0 : index
    %c0_2 = arith.constant 0 : index
    %1 = vector.load %arg2[%c0_1, %c0_2] : memref<128x128xf32, #tpu.memory_space<vmem>>, vector<128x128xf32>
    %cst = arith.constant dense<0.000000e+00> : vector<128x128xf32>
    %2 = tpu.matmul %0, %1, %cst {dimension_numbers = #tpu.dot_dimension_numbers<[1], [0], [0], [1], [0, 0, 1, 1], [], []>} : vector<128x128xf32>, vector<128x128xf32>, vector<128x128xf32> -> vector<128x128xf32>
    %c0_3 = arith.constant 0 : index
    %c0_4 = arith.constant 0 : index
    %3 = vector.load %arg3[%c0_3, %c0_4] : memref<128x128xf32, #tpu.memory_space<vmem>>, vector<128x128xf32>
    tpu.vector_store %arg3[%c0_3, %c0_4], %2 {strides = array<i32>} : memref<128x128xf32, #tpu.memory_space<vmem>>, vector<128x128xf32>,
    return
  }
  func.func @transform_0(%arg0: i32) -> (i32, i32) {
    %c0_i32 = arith.constant 0 : i32
    %c0_i32_0 = arith.constant 0 : i32
    return %arg0, %c0_i32 : i32, i32
  }
  func.func @transform_1(%arg0: i32) -> (i32, i32) {
    %c0_i32 = arith.constant 0 : i32
    %c0_i32_0 = arith.constant 0 : i32
    %c0_i32_1 = arith.constant 0 : i32
    return %c0_i32, %c0_i32_0 : i32, i32
  }
  func.func @transform_2(%arg0: i32) -> (i32, i32) {
    %c0_i32 = arith.constant 0 : i32
    %c0_i32_0 = arith.constant 0 : i32
    return %arg0, %c0_i32 : i32, i32
  }
}

module attributes {stable_mosaic.version = 11 : i64} {
  func.func @_aggregate_kernel(%arg0: i32, %arg1: i32, %arg2: memref<128x128xf32, #tpu.memory_space<vmem>>, %arg3: memref<128x128xf32, #tpu.memory_space<vmem>>, %arg4: memref<1x128xf32, #tpu.memory_space<vmem>>, %arg5: memref<128x128xf32, #tpu.memory_space<vmem>>, %arg6: memref<128x128xf32, #tpu.memory_space<vmem>>) attributes {dimension_semantics = [#tpu.dimension_semantics<parallel>, #tpu.dimension_semantics<arbitrary>], iteration_bounds = array<i64: 1, 1>, scalar_prefetch = 0 : i64, scratch_operands = 1 : i64, tpu.core_type = #tpu.core_type<tc>, window_params = [{transform_indices = @transform_0, window_bounds = array<i64: 128, 128>}, {transform_indices = @transform_1, window_bounds = array<i64: 128, 128>}, {pipeline_mode = #tpu.pipeline_mode<synchronous>, transform_indices = @transform_2, window_bounds = array<i64: 1, 128>}, {transform_indices = @transform_3, window_bounds = array<i64: 128, 128>}]} {
    %c0_i32 = arith.constant 0 : i32
    %0 = arith.cmpi eq, %arg1, %c0_i32 : i32
    %1 = arith.extui %0 : i1 to i32
    %c0_i32_0 = arith.constant 0 : i32
    %2 = arith.cmpi ne, %1, %c0_i32_0 : i32
    scf.if %2 {
      %cst_10 = arith.constant 0.000000e+00 : f32
      %12 = vector.broadcast %cst_10 : f32 to vector<128x128xf32>
      %c0_11 = arith.constant 0 : index
      %c0_12 = arith.constant 0 : index
      %13 = vector.load %arg6[%c0_11, %c0_12] : memref<128x128xf32, #tpu.memory_space<vmem>>, vector<128x128xf32>
      tpu.vector_store %arg6[%c0_11, %c0_12], %12 {strides = array<i32>} : memref<128x128xf32, #tpu.memory_space<vmem>>, vector<128x128xf32>,
    } else {
    }
    %c0 = arith.constant 0 : index
    %c0_1 = arith.constant 0 : index
    %3 = vector.load %arg6[%c0, %c0_1] : memref<128x128xf32, #tpu.memory_space<vmem>>, vector<128x128xf32>
    %c0_2 = arith.constant 0 : index
    %c0_3 = arith.constant 0 : index
    %4 = vector.load %arg2[%c0_2, %c0_3] : memref<128x128xf32, #tpu.memory_space<vmem>>, vector<128x128xf32>
    %c0_4 = arith.constant 0 : index
    %c0_5 = arith.constant 0 : index
    %5 = vector.load %arg3[%c0_4, %c0_5] : memref<128x128xf32, #tpu.memory_space<vmem>>, vector<128x128xf32>
    %cst = arith.constant dense<0.000000e+00> : vector<128x128xf32>
    %6 = tpu.matmul %4, %5, %cst {dimension_numbers = #tpu.dot_dimension_numbers<[1], [0], [0], [1], [0, 0, 1, 1], [], []>} : vector<128x128xf32>, vector<128x128xf32>, vector<128x128xf32> -> vector<128x128xf32>
    %7 = arith.addf %3, %6 : vector<128x128xf32>
    %c0_6 = arith.constant 0 : index
    %c0_7 = arith.constant 0 : index
    %8 = vector.load %arg6[%c0_6, %c0_7] : memref<128x128xf32, #tpu.memory_space<vmem>>, vector<128x128xf32>
    tpu.vector_store %arg6[%c0_6, %c0_7], %7 {strides = array<i32>} : memref<128x128xf32, #tpu.memory_space<vmem>>, vector<128x128xf32>,
    %c0_i32_8 = arith.constant 0 : i32
    %9 = arith.cmpi eq, %arg1, %c0_i32_8 : i32
    %10 = arith.extui %9 : i1 to i32
    %c0_i32_9 = arith.constant 0 : i32
    %11 = arith.cmpi ne, %10, %c0_i32_9 : i32
    scf.if %11 {
      %c0_10 = arith.constant 0 : index
      %c0_11 = arith.constant 0 : index
      %12 = vector.load %arg6[%c0_10, %c0_11] : memref<128x128xf32, #tpu.memory_space<vmem>>, vector<128x128xf32>
      %c0_12 = arith.constant 0 : index
      %c0_13 = arith.constant 0 : index
      %13 = vector.load %arg4[%c0_12, %c0_13] : memref<1x128xf32, #tpu.memory_space<vmem>>, vector<1x128xf32>
      %14 = vector.broadcast %13 : vector<1x128xf32> to vector<128x128xf32>
      %15 = arith.addf %12, %14 : vector<128x128xf32>
      %c0_14 = arith.constant 0 : index
      %c0_15 = arith.constant 0 : index
      %16 = vector.load %arg5[%c0_14, %c0_15] : memref<128x128xf32, #tpu.memory_space<vmem>>, vector<128x128xf32>
      tpu.vector_store %arg5[%c0_14, %c0_15], %15 {strides = array<i32>} : memref<128x128xf32, #tpu.memory_space<vmem>>, vector<128x128xf32>,
    } else {
    }
    return
  }
  func.func @transform_0(%arg0: i32, %arg1: i32) -> (i32, i32) {
    %c0_i32 = arith.constant 0 : i32
    return %arg0, %arg1 : i32, i32
  }
  func.func @transform_1(%arg0: i32, %arg1: i32) -> (i32, i32) {
    %c0_i32 = arith.constant 0 : i32
    %c0_i32_0 = arith.constant 0 : i32
    return %arg1, %c0_i32 : i32, i32
  }
  func.func @transform_2(%arg0: i32, %arg1: i32) -> (i32, i32) {
    %c0_i32 = arith.constant 0 : i32
    %c0_i32_0 = arith.constant 0 : i32
    %c0_i32_1 = arith.constant 0 : i32
    return %c0_i32, %c0_i32_0 : i32, i32
  }
  func.func @transform_3(%arg0: i32, %arg1: i32) -> (i32, i32) {
    %c0_i32 = arith.constant 0 : i32
    %c0_i32_0 = arith.constant 0 : i32
    return %arg0, %c0_i32 : i32, i32
  }
}

</mosaic_0001>

<bundles_post_ra>
// kernel: graph_convolution.2
= control target key start
LH: loop header
LB: loop body
LE: loop exit
PB: predicated region body
PF: predicated region fallthrough
CT: control target
= control target key end

     0   :  { %s487_s1 = inlined_call_operand.vmem [shape: f32[128,128], index: 1, kind: input, shape index: {}]   ;;  %s488_s0 = inlined_call_operand.vmem [shape: f32[128,128], index: 0, kind: input, shape index: {}]   ;;  %s489_s2 = inlined_call_operand.vmem [shape: f32[128,128], index: 2, kind: output, shape index: {}]  }
   0x1   :  { %v42_v0 = vld [vmem:[%s487_s1 + $0x78] sm:$0xff]  ;;  %v41_v1 = vld [vmem:[%s487_s1 + $0x70] sm:$0xff]  ;;  %v40_v2 = vld [vmem:[%s487_s1 + $0x68] sm:$0xff] }
   0x2   :  { %240 = vmatprep.subr.mxu0 %v42_v0  ;;  %296 = vmatprep.subr.mxu1 %v42_v0  ;;  %v39_v3 = vld [vmem:[%s487_s1 + $0x60] sm:$0xff]  ;;  %v38_v4 = vld [vmem:[%s487_s1 + $0x58] sm:$0xff]  ;;  %v37_v5 = vld [vmem:[%s487_s1 + $0x50] sm:$0xff] }
   0x3   :  { %241 = vmatpush3.msra.mxu0 %v42_v0  ;;  %312 = vmatpush3.msra.mxu1 %v42_v0  ;;  %v36_v6 = vld [vmem:[%s487_s1 + $0x48] sm:$0xff]  ;;  %v35_v7 = vld [vmem:[%s487_s1 + $0x40] sm:$0xff]  ;;  %v34_v8 = vld [vmem:[%s487_s1 + $0x38] sm:$0xff] }
   0x4   :  { %242 = vmatprep.subr.mxu0 %v41_v1  ;;  %297 = vmatprep.subr.mxu1 %v41_v1  ;;  %v33_v9 = vld [vmem:[%s487_s1 + $0x30] sm:$0xff]  ;;  %v32_v10 = vld [vmem:[%s487_s1 + $0x28] sm:$0xff]  ;;  %v31_v11 = vld [vmem:[%s487_s1 + $0x20] sm:$0xff] }
   0x5   :  { %243 = vmatpush3.msra.mxu0 %v41_v1  ;;  %313 = vmatpush3.msra.mxu1 %v41_v1  ;;  %v30_v12 = vld [vmem:[%s487_s1 + $0x18] sm:$0xff]  ;;  %v29_v13 = vld [vmem:[%s487_s1 + $0x10] sm:$0xff]  ;;  %v28_v14 = vld [vmem:[%s487_s1 + $0x8] sm:$0xff] }
   0x6   :  { %244 = vmatprep.subr.mxu0 %v40_v2  ;;  %298 = vmatprep.subr.mxu1 %v40_v2  ;;  %v27_v15 = vld [vmem:[%s487_s1] sm:$0xff]  ;;  %v12_v18 = vld [vmem:[%s488_s0 + $0x8] sm:$0xff]  ;;  %v13_v20 = vld [vmem:[%s488_s0 + $0x10] sm:$0xff] }
   0x7   :  { %245 = vmatpush3.msra.mxu0 %v40_v2  ;;  %314 = vmatpush3.msra.mxu1 %v40_v2  ;;  %v11_v16 = vld [vmem:[%s488_s0] sm:$0xff]  ;;  %v20_v19 = vld [vmem:[%s488_s0 + $0x48] sm:$0xff]  ;;  %v21_v21 = vld [vmem:[%s488_s0 + $0x50] sm:$0xff] }
   0x8   :  { %246 = vmatprep.subr.mxu0 %v39_v3  ;;  %299 = vmatprep.subr.mxu1 %v39_v3  ;;  %v19_v17 = vld [vmem:[%s488_s0 + $0x40] sm:$0xff]  ;;  %v14_v22 = vld [vmem:[%s488_s0 + $0x18] sm:$0xff]  ;;  %v16_v26 = vld [vmem:[%s488_s0 + $0x28] sm:$0xff] }
   0x9   :  { %247 = vmatpush3.msra.mxu0 %v39_v3  ;;  %315 = vmatpush3.msra.mxu1 %v39_v3  ;;  %v22_v23 = vld [vmem:[%s488_s0 + $0x58] sm:$0xff]  ;;  %v15_v24 = vld [vmem:[%s488_s0 + $0x20] sm:$0xff]  ;;  %v24_v27 = vld [vmem:[%s488_s0 + $0x68] sm:$0xff] }
   0xa   :  { %248 = vmatprep.subr.mxu0 %v38_v4  ;;  %300 = vmatprep.subr.mxu1 %v38_v4  ;;  %v23_v25 = vld [vmem:[%s488_s0 + $0x60] sm:$0xff]  ;;  %v17_v28 = vld [vmem:[%s488_s0 + $0x30] sm:$0xff]  ;;  %v18_v30 = vld [vmem:[%s488_s0 + $0x38] sm:$0xff] }
   0xb   :  { %249 = vmatpush3.msra.mxu0 %v38_v4  ;;  %316 = vmatpush3.msra.mxu1 %v38_v4  ;;  %v25_v29 = vld [vmem:[%s488_s0 + $0x70] sm:$0xff]  ;;  %v26_v31 = vld [vmem:[%s488_s0 + $0x78] sm:$0xff] }
   0xc   :  { %250 = vmatprep.subr.mxu0 %v37_v5  ;;  %301 = vmatprep.subr.mxu1 %v37_v5 }
   0xd   :  { %251 = vmatpush3.msra.mxu0 %v37_v5  ;;  %317 = vmatpush3.msra.mxu1 %v37_v5 }
   0xe   :  { %252 = vmatprep.subr.mxu0 %v36_v6  ;;  %302 = vmatprep.subr.mxu1 %v36_v6 }
   0xf   :  { %253 = vmatpush3.msra.mxu0 %v36_v6  ;;  %318 = vmatpush3.msra.mxu1 %v36_v6 }
  0x10   :  { %254 = vmatprep.subr.mxu0 %v35_v7  ;;  %303 = vmatprep.subr.mxu1 %v35_v7 }
  0x11   :  { %255 = vmatpush3.msra.mxu0 %v35_v7  ;;  %319 = vmatpush3.msra.mxu1 %v35_v7 }
  0x12   :  { %256 = vmatprep.subr.mxu0 %v34_v8  ;;  %304 = vmatprep.subr.mxu1 %v34_v8 }
  0x13   :  { %257 = vmatpush3.msra.mxu0 %v34_v8  ;;  %320 = vmatpush3.msra.mxu1 %v34_v8 }
  0x14   :  { %258 = vmatprep.subr.mxu0 %v33_v9  ;;  %305 = vmatprep.subr.mxu1 %v33_v9 }
  0x15   :  { %259 = vmatpush3.msra.mxu0 %v33_v9  ;;  %321 = vmatpush3.msra.mxu1 %v33_v9 }
  0x16   :  { %260 = vmatprep.subr.mxu0 %v32_v10  ;;  %306 = vmatprep.subr.mxu1 %v32_v10 }
  0x17   :  { %261 = vmatpush3.msra.mxu0 %v32_v10  ;;  %322 = vmatpush3.msra.mxu1 %v32_v10 }
  0x18   :  { %262 = vmatprep.subr.mxu0 %v31_v11  ;;  %307 = vmatprep.subr.mxu1 %v31_v11 }
  0x19   :  { %263 = vmatpush3.msra.mxu0 %v31_v11  ;;  %323 = vmatpush3.msra.mxu1 %v31_v11 }
  0x1a   :  { %264 = vmatprep.subr.mxu0 %v30_v12  ;;  %308 = vmatprep.subr.mxu1 %v30_v12 }
  0x1b   :  { %265 = vmatpush3.msra.mxu0 %v30_v12  ;;  %324 = vmatpush3.msra.mxu1 %v30_v12 }
  0x1c   :  { %266 = vmatprep.subr.mxu0 %v29_v13  ;;  %309 = vmatprep.subr.mxu1 %v29_v13 }
  0x1d   :  { %267 = vmatpush3.msra.mxu0 %v29_v13  ;;  %325 = vmatpush3.msra.mxu1 %v29_v13 }
  0x1e   :  { %268 = vmatprep.subr.mxu0 %v28_v14  ;;  %310 = vmatprep.subr.mxu1 %v28_v14 }
  0x1f   :  { %269 = vmatpush3.msra.mxu0 %v28_v14  ;;  %326 = vmatpush3.msra.mxu1 %v28_v14 }
  0x20   :  { %270 = vmatprep.subr.mxu0 %v27_v15  ;;  %311 = vmatprep.subr.mxu1 %v27_v15 }
  0x21   :  { %271 = vmatpush3.msra.mxu0 %v27_v15  ;;  %327 = vmatpush3.msra.mxu1 %v27_v15 }
  0x22   :  { %272 = vmatprep.mubr.f32.mxu0 %v11_v16  ;;  %284 = vmatprep.mubr.f32.mxu1 %v19_v17 }
  0x23   :  { %273 = vmatmul.mubr.f32.vlgmr.msra.gmra.mxu0 %v12_v18  ;;  %285 = vmatmul.mubr.f32.vlgmr.msra.gmra.mxu1 %v20_v19 }
  0x24   :  { %275 = vmatprep.mubr.f32.mxu0 %v13_v20  ;;  %287 = vmatprep.mubr.f32.mxu1 %v21_v21 }
  0x27   :  { %276 = vmatmul.mubr.f32.gmra.mxu0 %v14_v22  ;;  %288 = vmatmul.mubr.f32.gmra.mxu1 %v22_v23 }
  0x28   :  { %278 = vmatprep.mubr.f32.mxu0 %v15_v24  ;;  %290 = vmatprep.mubr.f32.mxu1 %v23_v25 }
  0x2b   :  { %279 = vmatmul.mubr.f32.gmra.mxu0 %v16_v26  ;;  %291 = vmatmul.mubr.f32.gmra.mxu1 %v24_v27 }
  0x2c   :  { %281 = vmatprep.mubr.f32.mxu0 %v17_v28  ;;  %293 = vmatprep.mubr.f32.mxu1 %v25_v29 }
  0x2f   :  { %282 = vmatmul.mubr.f32.gmra.mxu0 %v18_v30  ;;  %294 = vmatmul.mubr.f32.gmra.mxu1 %v26_v31 }
  0xe3   :  { %v274_v32 = vpop.f32.mrf.mxu0  ;;  %v286_v33 = vpop.f32.mrf.mxu1 }
  0xe4   :  { %189 = vst [vmem:[%s489_s2 + $0x8] sm:$0xff] %v274_v32  ;;  %197 = vst [vmem:[%s489_s2 + $0x48] sm:$0xff] %v286_v33 }
  0xe5   :  { %v109_v34 = vpop.f32.mrf.mxu0  ;;  %v149_v35 = vpop.f32.mrf.mxu1 }
  0xe6   :  { %188 = vst [vmem:[%s489_s2] sm:$0xff] %v109_v34  ;;  %196 = vst [vmem:[%s489_s2 + $0x40] sm:$0xff] %v149_v35 }
  0xe7   :  { %v277_v36 = vpop.f32.mrf.mxu0  ;;  %v289_v37 = vpop.f32.mrf.mxu1 }
  0xe8   :  { %191 = vst [vmem:[%s489_s2 + $0x18] sm:$0xff] %v277_v36  ;;  %199 = vst [vmem:[%s489_s2 + $0x58] sm:$0xff] %v289_v37 }
  0xe9   :  { %v119_v38 = vpop.f32.mrf.mxu0  ;;  %v159_v39 = vpop.f32.mrf.mxu1 }
  0xea   :  { %190 = vst [vmem:[%s489_s2 + $0x10] sm:$0xff] %v119_v38  ;;  %198 = vst [vmem:[%s489_s2 + $0x50] sm:$0xff] %v159_v39 }
  0xeb   :  { %v280_v40 = vpop.f32.mrf.mxu0  ;;  %v292_v41 = vpop.f32.mrf.mxu1 }
  0xec   :  { %193 = vst [vmem:[%s489_s2 + $0x28] sm:$0xff] %v280_v40  ;;  %201 = vst [vmem:[%s489_s2 + $0x68] sm:$0xff] %v292_v41 }
  0xed   :  { %v129_v42 = vpop.f32.mrf.mxu0  ;;  %v169_v43 = vpop.f32.mrf.mxu1 }
  0xee   :  { %192 = vst [vmem:[%s489_s2 + $0x20] sm:$0xff] %v129_v42  ;;  %200 = vst [vmem:[%s489_s2 + $0x60] sm:$0xff] %v169_v43 }
  0xef   :  { %v283_v44 = vpop.f32.mrf.mxu0  ;;  %v295_v45 = vpop.f32.mrf.mxu1 }
  0xf0   :  { %195 = vst [vmem:[%s489_s2 + $0x38] sm:$0xff] %v283_v44  ;;  %203 = vst [vmem:[%s489_s2 + $0x78] sm:$0xff] %v295_v45 }
  0xf1   :  { %v139_v46 = vpop.f32.mrf.mxu0  ;;  %v179_v47 = vpop.f32.mrf.mxu1 }
  0xf2   :  { %194 = vst [vmem:[%s489_s2 + $0x30] sm:$0xff] %v139_v46  ;;  %202 = vst [vmem:[%s489_s2 + $0x70] sm:$0xff] %v179_v47 }

// kernel: graph_convolution.3
= control target key start
LH: loop header
LB: loop body
LE: loop exit
PB: predicated region body
PF: predicated region fallthrough
CT: control target
= control target key end

     0   :  { %s605_s0 = inlined_call_operand.vmem [shape: f32[128,128], index: 0, kind: input, shape index: {}]   ;;  %s606_s1 = inlined_call_operand.vmem [shape: f32[128,128], index: 1, kind: input, shape index: {}]   ;;  %s607_s2 = inlined_call_operand.vmem [shape: f32[1,128], index: 2, kind: input, shape index: {}]   ;;  %s608_s3 = inlined_call_operand.hbm [shape: f32[128,128], index: 3, kind: output, shape index: {}]  }
   0x1   :  { %v82_v0 = vld [vmem:[%s606_s1 + $0x78] sm:$0xff]  ;;  %v81_v1 = vld [vmem:[%s606_s1 + $0x70] sm:$0xff]  ;;  %v80_v2 = vld [vmem:[%s606_s1 + $0x68] sm:$0xff] }
   0x2   :  { %367 = vmatprep.subr.mxu0 %v82_v0  ;;  %423 = vmatprep.subr.mxu1 %v82_v0  ;;  %v79_v3 = vld [vmem:[%s606_s1 + $0x60] sm:$0xff]  ;;  %v78_v4 = vld [vmem:[%s606_s1 + $0x58] sm:$0xff]  ;;  %v77_v5 = vld [vmem:[%s606_s1 + $0x50] sm:$0xff] }
   0x3   :  { %368 = vmatpush3.msra.mxu0 %v82_v0  ;;  %439 = vmatpush3.msra.mxu1 %v82_v0  ;;  %v76_v6 = vld [vmem:[%s606_s1 + $0x48] sm:$0xff] }
   0x4   :  { %369 = vmatprep.subr.mxu0 %v81_v1  ;;  %424 = vmatprep.subr.mxu1 %v81_v1 }
   0x5   :  { %370 = vmatpush3.msra.mxu0 %v81_v1  ;;  %440 = vmatpush3.msra.mxu1 %v81_v1 }
   0x6   :  { %371 = vmatprep.subr.mxu0 %v80_v2  ;;  %425 = vmatprep.subr.mxu1 %v80_v2 }
   0x7   :  { %372 = vmatpush3.msra.mxu0 %v80_v2  ;;  %441 = vmatpush3.msra.mxu1 %v80_v2 }
   0x8   :  { %373 = vmatprep.subr.mxu0 %v79_v3  ;;  %426 = vmatprep.subr.mxu1 %v79_v3 }
   0x9   :  { %374 = vmatpush3.msra.mxu0 %v79_v3  ;;  %442 = vmatpush3.msra.mxu1 %v79_v3 }
   0xa   :  { %375 = vmatprep.subr.mxu0 %v78_v4  ;;  %427 = vmatprep.subr.mxu1 %v78_v4 }
   0xb   :  { %376 = vmatpush3.msra.mxu0 %v78_v4  ;;  %443 = vmatpush3.msra.mxu1 %v78_v4 }
   0xc   :  { %8 = vsyncpa [#allocation4], 0  ;;  %377 = vmatprep.subr.mxu0 %v77_v5  ;;  %428 = vmatprep.subr.mxu1 %v77_v5  ;;  %v75_v7 = vld [vmem:[%s606_s1 + $0x40] sm:$0xff]  ;;  %v74_v8 = vld [vmem:[%s606_s1 + $0x38] sm:$0xff] }
   0xd   :  { %378 = vmatpush3.msra.mxu0 %v77_v5  ;;  %444 = vmatpush3.msra.mxu1 %v77_v5  ;;  %v73_v9 = vld [vmem:[%s606_s1 + $0x30] sm:$0xff]  ;;  %v72_v10 = vld [vmem:[%s606_s1 + $0x28] sm:$0xff]  ;;  %v71_v11 = vld [vmem:[%s606_s1 + $0x20] sm:$0xff] }
   0xe   :  { %379 = vmatprep.subr.mxu0 %v76_v6  ;;  %429 = vmatprep.subr.mxu1 %v76_v6  ;;  %v70_v12 = vld [vmem:[%s606_s1 + $0x18] sm:$0xff]  ;;  %v69_v13 = vld [vmem:[%s606_s1 + $0x10] sm:$0xff]  ;;  %v68_v14 = vld [vmem:[%s606_s1 + $0x8] sm:$0xff] }
   0xf   :  { %380 = vmatpush3.msra.mxu0 %v76_v6  ;;  %445 = vmatpush3.msra.mxu1 %v76_v6  ;;  %v67_v15 = vld [vmem:[%s606_s1] sm:$0xff]  ;;  %v52_v18 = vld [vmem:[%s605_s0 + $0x8] sm:$0xff]  ;;  %v53_v20 = vld [vmem:[%s605_s0 + $0x10] sm:$0xff] }
  0x10   :  { %381 = vmatprep.subr.mxu0 %v75_v7  ;;  %430 = vmatprep.subr.mxu1 %v75_v7  ;;  %v51_v16 = vld [vmem:[%s605_s0] sm:$0xff]  ;;  %v60_v19 = vld [vmem:[%s605_s0 + $0x48] sm:$0xff]  ;;  %v61_v21 = vld [vmem:[%s605_s0 + $0x50] sm:$0xff] }
  0x11   :  { %382 = vmatpush3.msra.mxu0 %v75_v7  ;;  %446 = vmatpush3.msra.mxu1 %v75_v7  ;;  %v59_v17 = vld [vmem:[%s605_s0 + $0x40] sm:$0xff]  ;;  %v54_v22 = vld [vmem:[%s605_s0 + $0x18] sm:$0xff]  ;;  %v56_v26 = vld [vmem:[%s605_s0 + $0x28] sm:$0xff] }
  0x12   :  { %383 = vmatprep.subr.mxu0 %v74_v8  ;;  %431 = vmatprep.subr.mxu1 %v74_v8  ;;  %v62_v23 = vld [vmem:[%s605_s0 + $0x58] sm:$0xff]  ;;  %v55_v24 = vld [vmem:[%s605_s0 + $0x20] sm:$0xff]  ;;  %v64_v27 = vld [vmem:[%s605_s0 + $0x68] sm:$0xff] }
  0x13   :  { %384 = vmatpush3.msra.mxu0 %v74_v8  ;;  %447 = vmatpush3.msra.mxu1 %v74_v8  ;;  %v63_v25 = vld [vmem:[%s605_s0 + $0x60] sm:$0xff]  ;;  %v57_v28 = vld [vmem:[%s605_s0 + $0x30] sm:$0xff]  ;;  %v58_v30 = vld [vmem:[%s605_s0 + $0x38] sm:$0xff] }
  0x14   :  { %385 = vmatprep.subr.mxu0 %v73_v9  ;;  %432 = vmatprep.subr.mxu1 %v73_v9  ;;  %v65_v29 = vld [vmem:[%s605_s0 + $0x70] sm:$0xff]  ;;  %v66_v31 = vld [vmem:[%s605_s0 + $0x78] sm:$0xff]  ;;  %v334_v32 = vld [vmem:[%s607_s2] ss:$0 sm:$0xff]  ;;  %s480_s0 = smov [#allocation3]  }
  0x15   :  { %386 = vmatpush3.msra.mxu0 %v73_v9  ;;  %448 = vmatpush3.msra.mxu1 %v73_v9  ;;  %s323_s2 = sshll.u32 %s480_s0, 4  ;;  %s324_s2 = int_to_ptr.vmem [resolvable:$true] %s323_s2 }
  0x16   :  { %387 = vmatprep.subr.mxu0 %v72_v10  ;;  %433 = vmatprep.subr.mxu1 %v72_v10  ;;  %s458_s23 = scalar_lea.vmem %s324_s2, 2048  ;;  %p463_p1 = scmp.lt.s32.totalorder %s324_s2, %s324_s2 }
  0x17   :  { %388 = vmatpush3.msra.mxu0 %v72_v10  ;;  %449 = vmatpush3.msra.mxu1 %v72_v10  ;;  %p459_p0 = scmp.ne.s32.totalorder %s324_s2, %s458_s23  ;;  %p464_p2 = scmp.lt.s32.totalorder %s458_s23, %s458_s23 }
  0x18   :  { %389 = vmatprep.subr.mxu0 %v71_v11  ;;  %434 = vmatprep.subr.mxu1 %v71_v11 }
  0x19   :  { %390 = vmatpush3.msra.mxu0 %v71_v11  ;;  %450 = vmatpush3.msra.mxu1 %v71_v11  ;;  %p465_p3 = por %p464_p2, %p463_p1 }
  0x1a   :  { %391 = vmatprep.subr.mxu0 %v70_v12  ;;  %435 = vmatprep.subr.mxu1 %v70_v12 }
  0x1b   :  { %392 = vmatpush3.msra.mxu0 %v70_v12  ;;  %451 = vmatpush3.msra.mxu1 %v70_v12  ;;  %p466_p4 = pnand %p465_p3, %p459_p0 }
  0x1c   :  { %393 = vmatprep.subr.mxu0 %v69_v13  ;;  %436 = vmatprep.subr.mxu1 %v69_v13 }
  0x1d   :  { %394 = vmatpush3.msra.mxu0 %v69_v13  ;;  %452 = vmatpush3.msra.mxu1 %v69_v13 }
  0x1e   :  { %395 = vmatprep.subr.mxu0 %v68_v14  ;;  %437 = vmatprep.subr.mxu1 %v68_v14 }
  0x1f   :  { %396 = vmatpush3.msra.mxu0 %v68_v14  ;;  %453 = vmatpush3.msra.mxu1 %v68_v14 }
  0x20   :  { %397 = vmatprep.subr.mxu0 %v67_v15  ;;  %438 = vmatprep.subr.mxu1 %v67_v15 }
  0x21   :  { %398 = vmatpush3.msra.mxu0 %v67_v15  ;;  %454 = vmatpush3.msra.mxu1 %v67_v15 }
  0x22   :  { %399 = vmatprep.mubr.f32.mxu0 %v51_v16  ;;  %411 = vmatprep.mubr.f32.mxu1 %v59_v17 }
  0x23   :  { %400 = vmatmul.mubr.f32.vlgmr.msra.gmra.mxu0 %v52_v18  ;;  %412 = vmatmul.mubr.f32.vlgmr.msra.gmra.mxu1 %v60_v19 }
  0x24   :  { %402 = vmatprep.mubr.f32.mxu0 %v53_v20  ;;  %414 = vmatprep.mubr.f32.mxu1 %v61_v21 }
  0x27   :  { %403 = vmatmul.mubr.f32.gmra.mxu0 %v54_v22  ;;  %415 = vmatmul.mubr.f32.gmra.mxu1 %v62_v23 }
  0x28   :  { %405 = vmatprep.mubr.f32.mxu0 %v55_v24  ;;  %417 = vmatprep.mubr.f32.mxu1 %v63_v25 }
  0x2b   :  { %406 = vmatmul.mubr.f32.gmra.mxu0 %v56_v26  ;;  %418 = vmatmul.mubr.f32.gmra.mxu1 %v64_v27 }
  0x2c   :  { %408 = vmatprep.mubr.f32.mxu0 %v57_v28  ;;  %420 = vmatprep.mubr.f32.mxu1 %v65_v29 }
  0x2f   :  { %409 = vmatmul.mubr.f32.gmra.mxu0 %v58_v30  ;;  %421 = vmatmul.mubr.f32.gmra.mxu1 %v66_v31 }
  0xe3   :  { %v401_v33 = vpop.f32.mrf.mxu0  ;;  %v413_v34 = vpop.f32.mrf.mxu1 }
  0xe4   :  { %v287_v35 = vadd.f32 %v401_v33, %v334_v32  ;;  %v295_v36 = vadd.f32 %v413_v34, %v334_v32 }
  0xe5   :  { %v149_v37 = vpop.f32.mrf.mxu0  ;;  %v189_v38 = vpop.f32.mrf.mxu1 }
  0xe6   :  { %303 = vst [vmem:[#allocation3 + $0x8] sm:$0xff] %v287_v35  ;;  %311 = vst [vmem:[#allocation3 + $0x48] sm:$0xff] %v295_v36  ;;  %v286_v39 = vadd.f32 %v334_v32, %v149_v37  ;;  %v294_v40 = vadd.f32 %v334_v32, %v189_v38 }
  0xe7   :  { %v404_v41 = vpop.f32.mrf.mxu0  ;;  %v416_v42 = vpop.f32.mrf.mxu1 }
  0xe8   :  { %302 = vst [vmem:[#allocation3] sm:$0xff] %v286_v39  ;;  %310 = vst [vmem:[#allocation3 + $0x40] sm:$0xff] %v294_v40  ;;  %v289_v43 = vadd.f32 %v404_v41, %v334_v32  ;;  %v297_v44 = vadd.f32 %v416_v42, %v334_v32 }
  0xe9   :  { %v159_v45 = vpop.f32.mrf.mxu0  ;;  %v199_v46 = vpop.f32.mrf.mxu1 }
  0xea   :  { %305 = vst [vmem:[#allocation3 + $0x18] sm:$0xff] %v289_v43  ;;  %313 = vst [vmem:[#allocation3 + $0x58] sm:$0xff] %v297_v44  ;;  %v288_v47 = vadd.f32 %v334_v32, %v159_v45  ;;  %v296_v48 = vadd.f32 %v334_v32, %v199_v46 }
  0xeb   :  { %v407_v49 = vpop.f32.mrf.mxu0  ;;  %v419_v50 = vpop.f32.mrf.mxu1 }
  0xec   :  { %304 = vst [vmem:[#allocation3 + $0x10] sm:$0xff] %v288_v47  ;;  %312 = vst [vmem:[#allocation3 + $0x50] sm:$0xff] %v296_v48  ;;  %v291_v51 = vadd.f32 %v407_v49, %v334_v32  ;;  %v299_v52 = vadd.f32 %v419_v50, %v334_v32 }
  0xed   :  { %v169_v53 = vpop.f32.mrf.mxu0  ;;  %v209_v54 = vpop.f32.mrf.mxu1 }
  0xee   :  { %307 = vst [vmem:[#allocation3 + $0x28] sm:$0xff] %v291_v51  ;;  %315 = vst [vmem:[#allocation3 + $0x68] sm:$0xff] %v299_v52  ;;  %v290_v55 = vadd.f32 %v334_v32, %v169_v53  ;;  %v298_v56 = vadd.f32 %v334_v32, %v209_v54 }
  0xef   :  { %v410_v57 = vpop.f32.mrf.mxu0  ;;  %v422_v58 = vpop.f32.mrf.mxu1 }
  0xf0   :  { %306 = vst [vmem:[#allocation3 + $0x20] sm:$0xff] %v290_v55  ;;  %314 = vst [vmem:[#allocation3 + $0x60] sm:$0xff] %v298_v56  ;;  %v293_v59 = vadd.f32 %v410_v57, %v334_v32  ;;  %v301_v60 = vadd.f32 %v422_v58, %v334_v32 }
  0xf1   :  { %v179_v61 = vpop.f32.mrf.mxu0  ;;  %v219_v62 = vpop.f32.mrf.mxu1 }
  0xf2   :  { %309 = vst [vmem:[#allocation3 + $0x38] sm:$0xff] %v293_v59  ;;  %317 = vst [vmem:[#allocation3 + $0x78] sm:$0xff] %v301_v60  ;;  %v292_v63 = vadd.f32 %v334_v32, %v179_v61  ;;  %v300_v0 = vadd.f32 %v334_v32, %v219_v62 }
  0xf4   :  { %308 = vst [vmem:[#allocation3 + $0x30] sm:$0xff] %v292_v63  ;;  %316 = vst [vmem:[#allocation3 + $0x70] sm:$0xff] %v300_v0 }
  0xf5   :  { %469 = shalt.err (!%p466_p4)
}
  0xf6   :  { %s481_s1 = smov 128   ;;  %s482_s24 = smov 8  }
  0xf7   :  { %329 = dma.vmem_to_hbm [thread:$0]  %s324_s2, 2048, %s608_s3, [#allocation4], %s481_s1, %s481_s1, %s482_s24  }
  0xf8   :  { %478 = dma.done.wait [#allocation4], 2048  }
  0xf9   :  { %479 = vsyncadd [#allocation4], 4294965248 }
  0xfa   :  { %333 = vsyncpa [#allocation4], 1 }

</bundles_post_ra>
